<compile_context>
chip_gen: v7x
topology: tpu7x:2x2x1
jax: 0.10.0
libtpu: 0.0.40
codegen_flags: <defaults>
</compile_context>

<pallas_src>
import jax
import jax.numpy as jnp
from jax.experimental import pallas as pl
from jax.experimental.pallas import tpu as pltpu


LANES = 128
SUBLANES = 8


def _cdiv(a, b):
    return -(-a // b)


def _num_tensorcores():
    """Best-effort TensorCore count (1 on v5e/v6e, 2 on v7x). Defaults to 1."""
    try:
        info = pltpu.get_tpu_info()
    except Exception:
        return 1
    for name in ("num_cores", "core_count", "tensorcore_count",
                 "num_tensorcores", "num_tensor_cores", "cores_per_chip"):
        v = getattr(info, name, None)
        try:
            v = int(v)
        except (TypeError, ValueError):
            continue
        if v >= 1:
            return v
    return 1


def _make_kernel(block_rows, valid_rows, tiles_per_split, need_mask):
    """Kernel over a (block_rows, 128) input tile; (8, 128) f32 accumulator."""

    def kernel(x_ref, t_ref, out_ref):
        # Zero the resident per-split accumulator on the first inner step.
        @pl.when(pl.program_id(1) == 0)
        def _():
            out_ref[...] = jnp.zeros_like(out_ref)

        t_nat = t_ref[...]                      # native dtype (f32 or bf16)
        x = x_ref[...].astype(jnp.float32)
        t = t_nat.astype(jnp.float32)

        # compute_weights: 1, then 2 if >=2, 5 if >=5, 10 if >=10, 50 if >=30.
        # Thresholds/weights are exact in bf16, so the compare/select ladder
        # runs on native-dtype vregs (halves VALU work for bf16 inputs).
        dt = t_nat.dtype
        two = jnp.asarray(2, dtype=dt)
        five = jnp.asarray(5, dtype=dt)
        ten = jnp.asarray(10, dtype=dt)
        thirty = jnp.asarray(30, dtype=dt)
        fifty = jnp.asarray(50, dtype=dt)
        w = jnp.ones_like(t_nat)
        w = jnp.where(t_nat >= two, two, w)
        w = jnp.where(t_nat >= five, five, w)
        w = jnp.where(t_nat >= ten, ten, w)
        w = jnp.where(t_nat >= thirty, fifty, w)

        d = x - t
        contrib = w.astype(jnp.float32) * d * d     # (block_rows, 128) f32

        if need_mask:
            # Mask rows past the valid row count: handles the ragged last
            # tile AND any clamped overhang tile from an uneven split.
            gidx = pl.program_id(0) * tiles_per_split + pl.program_id(1)
            row = (jax.lax.broadcasted_iota(jnp.int32, contrib.shape, 0)
                   + gidx * block_rows)
            contrib = jnp.where(row < valid_rows, contrib, 0.0)

        # Reduce only over the leading (vreg) axis: pure VPU adds, no
        # cross-lane/sublane XLU work in the hot loop.
        out_ref[...] += jnp.sum(
            contrib.reshape(-1, SUBLANES, LANES), axis=0)

    return kernel


def _weighted_sq_sum(x, t):
    """Pure-JAX weighted squared-error sum (used for the tiny tail)."""
    t = t.astype(jnp.float32)
    x = x.astype(jnp.float32)
    w = jnp.ones_like(t)
    w = jnp.where(t >= 2.0, 2.0, w)
    w = jnp.where(t >= 5.0, 5.0, w)
    w = jnp.where(t >= 10.0, 10.0, w)
    w = jnp.where(t >= 30.0, 50.0, w)
    d = x - t
    return jnp.sum(w * d * d)


def bmse_loss(x, target, *, tile_rows=8192, num_splits=None):
    """Weighted MSE loss matching BMSELoss.forward (PyTorch)."""
    assert x.shape == target.shape
    assert tile_rows > 0 and tile_rows % SUBLANES == 0

    total = x.size
    if total == 0:
        return jnp.float32(float("nan"))   # torch.mean of empty -> nan

    xf = x.reshape(-1)
    tf = target.reshape(-1)

    rows = total // LANES                  # full 128-lane rows
    main = rows * LANES if rows >= SUBLANES else 0
    rem = total - main                     # tail handled in pure JAX

    kernel_sum = jnp.float32(0.0)
    if main:
        rows_main = main // LANES
        # block_rows: multiple of 8, <= rows_main, <= tile_rows.
        block_rows = min(tile_rows, (rows_main // SUBLANES) * SUBLANES)
        total_tiles = _cdiv(rows_main, block_rows)

        n_cores = _num_tensorcores()
        nsplits = n_cores if num_splits is None else int(num_splits)
        nsplits = max(1, min(nsplits, total_tiles))
        tiles_per_split = _cdiv(total_tiles, nsplits)

        uneven_split = nsplits * tiles_per_split != total_tiles
        ragged_rows = rows_main % block_rows != 0
        need_mask = ragged_rows or uneven_split

        # Contiguous prefix reshape (no pad copy; free when rem == 0).
        x2d = (xf if rem == 0 else xf[:main]).reshape(rows_main, LANES)
        t2d = (tf if rem == 0 else tf[:main]).reshape(rows_main, LANES)

        last_tile = total_tiles - 1
        if uneven_split:
            # Overhang tiles re-read the last valid tile; the in-kernel row
            # mask zeroes their contribution.
            in_map = lambda c, k: (
                jnp.minimum(c * tiles_per_split + k, last_tile), 0)
        else:
            in_map = lambda c, k: (c * tiles_per_split + k, 0)

        kernel = _make_kernel(block_rows, rows_main, tiles_per_split,
                              need_mask)

        itemsize = jnp.dtype(x.dtype).itemsize
        per_block_bytes = block_rows * LANES * itemsize
        vmem_limit = int(min(100 * 1024 * 1024,
                             max(32 * 1024 * 1024, 5 * per_block_bytes)))
        cost = pl.CostEstimate(
            flops=12 * main,
            transcendentals=0,
            bytes_accessed=2 * main * itemsize
            + nsplits * SUBLANES * LANES * 4,
        )

        def _call(dim_sem):
            return pl.pallas_call(
                kernel,
                out_shape=jax.ShapeDtypeStruct(
                    (nsplits * SUBLANES, LANES), jnp.float32),
                grid=(nsplits, tiles_per_split),
                in_specs=[
                    pl.BlockSpec((block_rows, LANES), in_map),
                    pl.BlockSpec((block_rows, LANES), in_map),
                ],
                out_specs=pl.BlockSpec((SUBLANES, LANES),
                                       lambda c, k: (c, 0)),
                compiler_params=pltpu.CompilerParams(
                    dimension_semantics=dim_sem,
                    vmem_limit_bytes=vmem_limit,
                ),
                cost_estimate=cost,
            )(x2d, t2d)

        if nsplits > 1 and n_cores > 1:
            # v7x: force the split axis onto both TensorCores; fall back to
            # the plain "parallel" path if CORE_PARALLEL lowering is rejected.
            try:
                out = _call((pltpu.CORE_PARALLEL, pltpu.ARBITRARY))
            except Exception:
                out = _call(("parallel", "arbitrary"))
        else:
            out = _call(("parallel", "arbitrary"))

        kernel_sum = jnp.sum(out)

    if rem:
        # < 128 leftover elements: fold in with a tiny pure-JAX epilogue
        # (avoids any full-array pad copy of the HBM-roofline-bound inputs).
        tail_sum = _weighted_sq_sum(xf[main:], tf[main:])
    else:
        tail_sum = jnp.float32(0.0)

    return (kernel_sum + tail_sum) / jnp.float32(total)


def bmse_loss_ref(x, target):
    """Pure-JAX reference for correctness check."""
    t = target.astype(jnp.float32)
    w = jnp.ones_like(t)
    w = jnp.where(t >= 2.0, 2.0, w)
    w = jnp.where(t >= 5.0, 5.0, w)
    w = jnp.where(t >= 10.0, 10.0, w)
    w = jnp.where(t >= 30.0, 50.0, w)
    return jnp.mean(w * (x.astype(jnp.float32) - t) ** 2)


if __name__ == "__main__":
    key = jax.random.PRNGKey(0)
    k1, k2 = jax.random.split(key)

    # Small NCHW shapes (rainfall-style predictions): batch=2, channels=4, 16x16.
    shape = (2, 4, 16, 16)
    x = jax.random.uniform(k1, shape, dtype=jnp.float32, minval=0.0, maxval=40.0)
    target = jax.random.uniform(k2, shape, dtype=jnp.float32, minval=0.0,
                                maxval=40.0)

    loss = jax.block_until_ready(bmse_loss(x, target))
    ref = bmse_loss_ref(x, target)
    assert jnp.allclose(loss, ref, rtol=1e-5, atol=1e-5), (loss, ref)

    # Ragged path: 5016 elements -> 39 lane-rows + 24-element tail epilogue,
    # multi-tile inner grid with a masked ragged last tile; also force a 2-way
    # split to exercise the guarded overhang tile of an uneven split.
    shape2 = (2, 4, 33, 19)
    x2 = jax.random.uniform(k1, shape2, dtype=jnp.float32, minval=0.0,
                            maxval=40.0)
    t2 = jax.random.uniform(k2, shape2, dtype=jnp.float32, minval=0.0,
                            maxval=40.0)
    r2 = bmse_loss_ref(x2, t2)
    l2a = jax.block_until_ready(bmse_loss(x2, t2, tile_rows=8))
    l2b = jax.block_until_ready(bmse_loss(x2, t2, tile_rows=8, num_splits=2))
    assert jnp.allclose(l2a, r2, rtol=1e-5, atol=1e-5), (l2a, r2)
    assert jnp.allclose(l2b, r2, rtol=1e-5, atol=1e-5), (l2b, r2)

    # bf16 input path (halved HBM traffic; native-dtype weight ladder).
    xb = x.astype(jnp.bfloat16)
    tb = target.astype(jnp.bfloat16)
    lb = jax.block_until_ready(bmse_loss(xb, tb))
    rb = bmse_loss_ref(xb, tb)
    assert jnp.allclose(lb, rb, rtol=1e-3, atol=1e-3), (lb, rb)

    print("KERNEL_OK")
</pallas_src>

<mosaic_0001>
module attributes {stable_mosaic.version = 11 : i64} {
  func.func @kernel(%arg0: i32, %arg1: i32, %arg2: memref<16x128xf32, #tpu.memory_space<vmem>>, %arg3: memref<16x128xf32, #tpu.memory_space<vmem>>, %arg4: memref<8x128xf32, #tpu.memory_space<vmem>>) attributes {dimension_semantics = [#tpu.dimension_semantics<parallel>, #tpu.dimension_semantics<arbitrary>], iteration_bounds = array<i64: 1, 1>, scalar_prefetch = 0 : i64, scratch_operands = 0 : i64, tpu.core_type = #tpu.core_type<tc>, window_params = [{transform_indices = @transform_0, window_bounds = array<i64: 16, 128>}, {transform_indices = @transform_1, window_bounds = array<i64: 16, 128>}, {transform_indices = @transform_2, window_bounds = array<i64: 8, 128>}]} {
    %c0_i32 = arith.constant 0 : i32
    %0 = arith.cmpi eq, %arg1, %c0_i32 : i32
    %1 = arith.extui %0 : i1 to i32
    %c0_i32_0 = arith.constant 0 : i32
    %2 = arith.cmpi ne, %1, %c0_i32_0 : i32
    scf.if %2 {
      %cst_17 = arith.constant 0.000000e+00 : f32
      %30 = vector.broadcast %cst_17 : f32 to vector<8x128xf32>
      %c0_18 = arith.constant 0 : index
      %c0_19 = arith.constant 0 : index
      %31 = vector.load %arg4[%c0_18, %c0_19] : memref<8x128xf32, #tpu.memory_space<vmem>>, vector<8x128xf32>
      tpu.vector_store %arg4[%c0_18, %c0_19], %30 {strides = array<i32>} : memref<8x128xf32, #tpu.memory_space<vmem>>, vector<8x128xf32>,
    } else {
    }
    %c0 = arith.constant 0 : index
    %c0_1 = arith.constant 0 : index
    %3 = vector.load %arg3[%c0, %c0_1] : memref<16x128xf32, #tpu.memory_space<vmem>>, vector<16x128xf32>
    %c0_2 = arith.constant 0 : index
    %c0_3 = arith.constant 0 : index
    %4 = vector.load %arg2[%c0_2, %c0_3] : memref<16x128xf32, #tpu.memory_space<vmem>>, vector<16x128xf32>
    %cst = arith.constant 1.000000e+00 : f32
    %5 = vector.broadcast %cst : f32 to vector<16x128xf32>
    %cst_4 = arith.constant 2.000000e+00 : f32
    %6 = vector.broadcast %cst_4 : f32 to vector<16x128xf32>
    %7 = arith.cmpf oge, %3, %6 : vector<16x128xf32>
    %cst_5 = arith.constant 2.000000e+00 : f32
    %8 = vector.broadcast %cst_5 : f32 to vector<16x128xf32>
    %9 = arith.select %7, %8, %5 : vector<16x128xi1>, vector<16x128xf32>
    %cst_6 = arith.constant 5.000000e+00 : f32
    %10 = vector.broadcast %cst_6 : f32 to vector<16x128xf32>
    %11 = arith.cmpf oge, %3, %10 : vector<16x128xf32>
    %cst_7 = arith.constant 5.000000e+00 : f32
    %12 = vector.broadcast %cst_7 : f32 to vector<16x128xf32>
    %13 = arith.select %11, %12, %9 : vector<16x128xi1>, vector<16x128xf32>
    %cst_8 = arith.constant 1.000000e+01 : f32
    %14 = vector.broadcast %cst_8 : f32 to vector<16x128xf32>
    %15 = arith.cmpf oge, %3, %14 : vector<16x128xf32>
    %cst_9 = arith.constant 1.000000e+01 : f32
    %16 = vector.broadcast %cst_9 : f32 to vector<16x128xf32>
    %17 = arith.select %15, %16, %13 : vector<16x128xi1>, vector<16x128xf32>
    %cst_10 = arith.constant 3.000000e+01 : f32
    %18 = vector.broadcast %cst_10 : f32 to vector<16x128xf32>
    %19 = arith.cmpf oge, %3, %18 : vector<16x128xf32>
    %cst_11 = arith.constant 5.000000e+01 : f32
    %20 = vector.broadcast %cst_11 : f32 to vector<16x128xf32>
    %21 = arith.select %19, %20, %17 : vector<16x128xi1>, vector<16x128xf32>
    %22 = arith.subf %4, %3 : vector<16x128xf32>
    %23 = arith.mulf %21, %22 : vector<16x128xf32>
    %24 = arith.mulf %23, %22 : vector<16x128xf32>
    %c0_12 = arith.constant 0 : index
    %c0_13 = arith.constant 0 : index
    %25 = vector.load %arg4[%c0_12, %c0_13] : memref<8x128xf32, #tpu.memory_space<vmem>>, vector<8x128xf32>
    %26 = vector.shape_cast %24 : vector<16x128xf32> to vector<2x8x128xf32>
    %cst_14 = arith.constant dense<0.000000e+00> : vector<8x128xf32>
    %27 = vector.multi_reduction <add>, %26, %cst_14 [0] : vector<2x8x128xf32> to vector<8x128xf32>
    %28 = arith.addf %25, %27 : vector<8x128xf32>
    %c0_15 = arith.constant 0 : index
    %c0_16 = arith.constant 0 : index
    %29 = vector.load %arg4[%c0_15, %c0_16] : memref<8x128xf32, #tpu.memory_space<vmem>>, vector<8x128xf32>
    tpu.vector_store %arg4[%c0_15, %c0_16], %28 {strides = array<i32>} : memref<8x128xf32, #tpu.memory_space<vmem>>, vector<8x128xf32>,
    return
  }
  func.func @transform_0(%arg0: i32, %arg1: i32) -> (i32, i32) {
    %c1_i32 = arith.constant 1 : i32
    %0 = arith.muli %arg0, %c1_i32 : i32
    %1 = arith.addi %0, %arg1 : i32
    %c0_i32 = arith.constant 0 : i32
    %c0_i32_0 = arith.constant 0 : i32
    return %1, %c0_i32 : i32, i32
  }
  func.func @transform_1(%arg0: i32, %arg1: i32) -> (i32, i32) {
    %c1_i32 = arith.constant 1 : i32
    %0 = arith.muli %arg0, %c1_i32 : i32
    %1 = arith.addi %0, %arg1 : i32
    %c0_i32 = arith.constant 0 : i32
    %c0_i32_0 = arith.constant 0 : i32
    return %1, %c0_i32 : i32, i32
  }
  func.func @transform_2(%arg0: i32, %arg1: i32) -> (i32, i32) {
    %c0_i32 = arith.constant 0 : i32
    %c0_i32_0 = arith.constant 0 : i32
    return %arg0, %c0_i32 : i32, i32
  }
}

</mosaic_0001>

<bundles_post_ra>
// kernel: tpu_custom_call.1
= control target key start
LH: loop header
LB: loop body
LE: loop exit
PB: predicated region body
PF: predicated region fallthrough
CT: control target
= control target key end

     0   :  { %7 = vsyncpa [#allocation3], 0  ;;  %s239_s0 = inlined_call_operand.hbm [shape: f32[16,128], index: 0, kind: input, shape index: {}]   ;;  %s240_s1 = inlined_call_operand.hbm [shape: f32[16,128], index: 1, kind: input, shape index: {}]   ;;  %s241_s2 = inlined_call_operand.hbm [shape: f32[8,128], index: 2, kind: output, shape index: {}]  }
   0x1   :  { %8 = vsyncpa [#allocation6], 0 }
   0x2   :  { %9 = vsyncpa [#allocation4], 0  ;;  %s182_s9 = smov [#allocation2]   ;;  %s110_s13 = scalar_lea.hbm %s239_s0, 256 }
   0x3   :  { %s19_s10 = sshll.u32 %s182_s9, 4  ;;  %p111_p0 = scmp.ne.s32.totalorder %s239_s0, %s110_s13  ;;  %s20_s10 = int_to_ptr.vmem [resolvable:$true] %s19_s10 }
   0x4   :  { %p114_p1 = scmp.lt.u32.totalorder %s110_s13, %s239_s0 }
   0x6   :  { %p116_p2 = pnand %p114_p1, %p111_p0 }
   0x8   :  { %119 = shalt.err (!%p116_p2)
}
   0x9   :  { %s120_s18 = scalar_lea.vmem %s20_s10, 256  ;;  %p125_p4 = scmp.lt.s32.totalorder %s20_s10, %s20_s10 }
   0xa   :  { %p121_p3 = scmp.ne.s32.totalorder %s20_s10, %s120_s18  ;;  %p126_p5 = scmp.lt.s32.totalorder %s120_s18, %s120_s18 }
   0xc   :  { %p127_p6 = por %p126_p5, %p125_p4 }
   0xe   :  { %p128_p7 = pnand %p127_p6, %p121_p3 }
  0x10   :  { %131 = shalt.err (!%p128_p7)
}
  0x11   :  { %s183_s19 = smov 128   ;;  %s184_s20 = smov 8  }
  0x12   :  { %25 = dma.hbm_to_vmem [thread:$0]  %s239_s0, 256, %s20_s10, [#allocation3], %s183_s19, %s183_s19, %s184_s20  }
  0x13   :  { %s185_s23 = smov [#allocation5]   ;;  %s132_s27 = scalar_lea.hbm %s240_s1, 256 }
  0x14   :  { %s35_s24 = sshll.u32 %s185_s23, 4  ;;  %p133_p8 = scmp.ne.s32.totalorder %s240_s1, %s132_s27  ;;  %s36_s24 = int_to_ptr.vmem [resolvable:$true] %s35_s24 }
  0x15   :  { %p136_p9 = scmp.lt.u32.totalorder %s132_s27, %s240_s1 }
  0x17   :  { %p138_p10 = pnand %p136_p9, %p133_p8 }
  0x19   :  { %141 = shalt.err (!%p138_p10)
}
  0x1a   :  { %s142_s4 = scalar_lea.vmem %s36_s24, 256  ;;  %p147_p12 = scmp.lt.s32.totalorder %s36_s24, %s36_s24 }
  0x1b   :  { %p143_p11 = scmp.ne.s32.totalorder %s36_s24, %s142_s4  ;;  %p148_p13 = scmp.lt.s32.totalorder %s142_s4, %s142_s4 }
  0x1d   :  { %p149_p0 = por %p148_p13, %p147_p12 }
  0x1f   :  { %p150_p1 = pnand %p149_p0, %p143_p11 }
  0x21   :  { %153 = shalt.err (!%p150_p1)
}
  0x22   :  { %41 = dma.hbm_to_vmem [thread:$0]  %s240_s1, 256, %s36_s24, [#allocation6], %s183_s19, %s183_s19, %s184_s20  }
  0x23   :  { %176 = dma.done.wait [#allocation3], 256  }
  0x24   :  { %177 = vsyncadd [#allocation3], 4294967040 }
  0x25   :  { %178 = dma.done.wait [#allocation6], 256  }
  0x26   :  { %179 = vsyncadd [#allocation6], 4294967040  ;;  %v57_v0 = vld [vmem:[#allocation5] sm:$0xff]  ;;  %v58_v1 = vld [vmem:[#allocation5 + $0x8] sm:$0xff]  ;;  %v186_v4 = vmov 1.0   ;;  %s187_s1 = smov [#allocation7]  }
  0x27   :  { %v59_v2 = vld [vmem:[#allocation2] sm:$0xff]  ;;  %v60_v3 = vld [vmem:[#allocation2 + $0x8] sm:$0xff]  ;;  %vm61_vm0 = vcmp.ge.f32.partialorder %v57_v0, 2.0  ;;  %vm62_vm1 = vcmp.ge.f32.partialorder %v58_v1, 2.0  ;;  %vm65_vm2 = vcmp.ge.f32.partialorder %v57_v0, 5.0  ;;  %vm66_vm3 = vcmp.ge.f32.partialorder %v58_v1, 5.0 }
  0x28   :  { %v63_v5 = vsel %vm61_vm0, 2.0, %v186_v4  ;;  %v64_v6 = vsel %vm62_vm1, 2.0, %v186_v4  ;;  %vm69_vm4 = vcmp.ge.f32.partialorder %v57_v0, 10.0  ;;  %vm70_vm5 = vcmp.ge.f32.partialorder %v58_v1, 10.0  ;;  %s93_s6 = sshll.u32 %s187_s1, 4  ;;  %s94_s6 = int_to_ptr.vmem [resolvable:$true] %s93_s6 }
  0x29   :  { %v67_v7 = vsel %vm65_vm2, 5.0, %v63_v5  ;;  %v68_v8 = vsel %vm66_vm3, 5.0, %v64_v6  ;;  %vm73_vm6 = vcmp.ge.f32.partialorder %v57_v0, 30.0  ;;  %vm74_vm7 = vcmp.ge.f32.partialorder %v58_v1, 30.0  ;;  %s154_s7 = scalar_lea.vmem %s94_s6, 128  ;;  %p159_p3 = scmp.lt.s32.totalorder %s94_s6, %s94_s6 }
  0x2a   :  { %v71_v9 = vsel %vm69_vm4, 10.0, %v67_v7  ;;  %v72_v10 = vsel %vm70_vm5, 10.0, %v68_v8  ;;  %v77_v11 = vsub.f32 %v59_v2, %v57_v0  ;;  %v78_v12 = vsub.f32 %v60_v3, %v58_v1  ;;  %p155_p2 = scmp.ne.s32.totalorder %s94_s6, %s154_s7  ;;  %p160_p4 = scmp.lt.s32.totalorder %s154_s7, %s154_s7 }
  0x2b   :  { %v75_v13 = vsel %vm73_vm6, 50.0, %v71_v9  ;;  %v76_v14 = vsel %vm74_vm7, 50.0, %v72_v10 }
  0x2c   :  { %v79_v15 = vmul.f32 %v77_v11, %v75_v13  ;;  %v80_v16 = vmul.f32 %v78_v12, %v76_v14  ;;  %p161_p5 = por %p160_p4, %p159_p3 }
  0x2e   :  { %v81_v17 = vmul.f32 %v79_v15, %v77_v11  ;;  %v82_v18 = vmul.f32 %v80_v16, %v78_v12  ;;  %p162_p6 = pnand %p161_p5, %p155_p2 }
  0x30   :  { %v84_v19 = vadd.f32 %v82_v18, %v81_v17 }
  0x32   :  { %86 = vst [vmem:[#allocation7] sm:$0xff] %v84_v19 }
  0x33   :  { %165 = shalt.err (!%p162_p6)
}
  0x34   :  { %s166_s10 = scalar_lea.hbm %s241_s2, 128 }
  0x35   :  { %p167_p7 = scmp.ne.s32.totalorder %s241_s2, %s166_s10  ;;  %p170_p8 = scmp.lt.u32.totalorder %s166_s10, %s241_s2 }
  0x37   :  { %p172_p9 = pnand %p170_p8, %p167_p7 }
  0x39   :  { %175 = shalt.err (!%p172_p9)
}
  0x3a   :  { %96 = dma.vmem_to_hbm [thread:$0]  %s94_s6, 128, %s241_s2, [#allocation4]  }
  0x3b   :  { %180 = dma.done.wait [#allocation4], 128  }
  0x3c   :  { %181 = vsyncadd [#allocation4], 4294967168 }
  0x3d   :  { %100 = vsyncpa [#allocation3], 1 }
  0x3e   :  { %101 = vsyncpa [#allocation6], 1 }
  0x3f   :  { %102 = vsyncpa [#allocation4], 1 }

</bundles_post_ra>
